<compile_context>
chip_gen: v7x
topology: tpu7x:2x2x1
jax: 0.10.0
libtpu: 0.0.40
codegen_flags: <defaults>
</compile_context>

<pallas_src>
import functools

import jax
import jax.numpy as jnp
import numpy as np
from jax.experimental import pallas as pl
from jax.experimental.pallas import tpu as pltpu


# ---------------------------------------------------------------------------
# Fused Pallas kernel: embedding lookup + num_layers LSTM cells + FC
# ---------------------------------------------------------------------------
def _decoder_step_kernel(*refs, num_layers, hidden_size, batch, compute_dtype):
    """Fused single decode step.

    Ref layout (inputs then outputs):
      refs[0]                 ids_ref    (B,)            int32, SMEM
      refs[1]                 emb_ref    (V, E)          f32,   VMEM
      refs[2 + 2l]            w_ref[l]   (In_l + H, 4H)  f32    ([W_ih; W_hh]^T)
      refs[3 + 2l]            b_ref[l]   (1, 4H)         f32    (b_ih + b_hh)
      refs[2 + 2L]            fc_w_ref   (H, O_pad)      f32
      refs[3 + 2L]            fc_b_ref   (1, O_pad)      f32
      refs[4 + 2L]            hc_in_ref  (B, 2*L*H)      f32    [h0|c0|h1|c1|...]
      refs[5 + 2L]            hc_out_ref (B, 2*L*H)      f32    (aliased w/ hc_in)
      refs[6 + 2L]            out_ref    (B, O_pad)      f32
    """
    H = hidden_size
    B = batch
    ids_ref, emb_ref = refs[0], refs[1]
    layer_refs = refs[2:2 + 2 * num_layers]
    fc_w_ref, fc_b_ref, hc_in_ref = refs[2 + 2 * num_layers:5 + 2 * num_layers]
    hc_out_ref, out_ref = refs[5 + 2 * num_layers:]

    # --- embedding gather: ids on the scalar path (SMEM), table VMEM-resident;
    # each row is a dynamic sublane slice of the (V, E) table.
    rows = [emb_ref[pl.ds(ids_ref[b], 1), :] for b in range(B)]
    x = jnp.concatenate(rows, axis=0)                       # (B, E), f32
    # dropout(embedding) -> identity (eval mode)

    hc = hc_in_ref[...]                                     # (B, 2*L*H)
    new_state = []
    for l in range(num_layers):
        w_ref = layer_refs[2 * l]
        b_ref = layer_refs[2 * l + 1]
        h = hc[:, (2 * l) * H:(2 * l + 1) * H]              # (B, H)
        c = hc[:, (2 * l + 1) * H:(2 * l + 2) * H]          # (B, H)

        # Single fused gate matmul: [x ; h] @ [W_ih ; W_hh]^T  -> (B, 4H)
        xh = jnp.concatenate([x, h], axis=1)
        gates = (jnp.dot(xh.astype(compute_dtype),
                         w_ref[...].astype(compute_dtype),
                         preferred_element_type=jnp.float32)
                 + b_ref[...])

        # Gate math stays f32 (v5e VPU/EUP have no bf16 path).
        i = jax.nn.sigmoid(gates[:, 0 * H:1 * H])
        f = jax.nn.sigmoid(gates[:, 1 * H:2 * H])
        g = jnp.tanh(gates[:, 2 * H:3 * H])
        o = jax.nn.sigmoid(gates[:, 3 * H:4 * H])
        c_new = f * c + i * g
        h_new = o * jnp.tanh(c_new)
        new_state += [h_new, c_new]
        x = h_new                                           # inter-layer dropout = identity

    # Lane-dense packed state write: (B, 2*L*H) -> full-vreg stores when 2*L*H % 128 == 0.
    hc_out_ref[...] = jnp.concatenate(new_state, axis=1)

    # FC head: (B, H) @ (H, O_pad) + (1, O_pad); O_pad is a multiple of 128.
    out_ref[...] = (jnp.dot(x.astype(compute_dtype),
                            fc_w_ref[...].astype(compute_dtype),
                            preferred_element_type=jnp.float32)
                    + fc_b_ref[...])


# ---------------------------------------------------------------------------
# Wrapper (matches PyTorch Decoder.forward semantics for one step)
# ---------------------------------------------------------------------------
def decoder_forward(params, x_ids, hidden, cell, output_size,
                    *, compute_dtype=jnp.float32):
    """
    x_ids:  (B,)  int32 token indices
    hidden: (num_layers, B, H)
    cell:   (num_layers, B, H)
    returns (predictions (B, output_size), hidden, cell)
    """
    num_layers, B, H = hidden.shape
    o_pad = params["fc_w_t_pad"].shape[1]

    # Pack state lane-dense: columns [h0 | c0 | h1 | c1 | ...] -> (B, 2*L*H).
    # (In a real decode loop you would carry this packed slab directly.)
    hc_in = jnp.concatenate(
        [jnp.concatenate([hidden[l], cell[l]], axis=1) for l in range(num_layers)],
        axis=1)

    operands = [x_ids.astype(jnp.int32), params["embedding"]]
    for l in range(num_layers):
        operands += [params[f"w_{l}"], params[f"b_{l}"]]
    operands += [params["fc_w_t_pad"], params["fc_b_pad"], hc_in]

    smem = pl.BlockSpec(memory_space=pltpu.MemorySpace.SMEM)
    vmem = pl.BlockSpec(memory_space=pltpu.MemorySpace.VMEM)
    in_specs = [smem] + [vmem] * (len(operands) - 1)

    kernel = functools.partial(
        _decoder_step_kernel,
        num_layers=num_layers,
        hidden_size=H,
        batch=B,
        compute_dtype=compute_dtype,
    )

    hc_out, logits_pad = pl.pallas_call(
        kernel,
        out_shape=(
            jax.ShapeDtypeStruct((B, 2 * num_layers * H), jnp.float32),
            jax.ShapeDtypeStruct((B, o_pad), jnp.float32),
        ),
        in_specs=in_specs,
        out_specs=(vmem, vmem),
        # Donate the packed state buffer: new state overwrites old state in HBM.
        input_output_aliases={len(operands) - 1: 0},
    )(*operands)

    predictions = logits_pad[:, :output_size]
    new_hidden = jnp.stack(
        [hc_out[:, (2 * l) * H:(2 * l + 1) * H] for l in range(num_layers)])
    new_cell = jnp.stack(
        [hc_out[:, (2 * l + 1) * H:(2 * l + 2) * H] for l in range(num_layers)])
    return predictions, new_hidden, new_cell


# ---------------------------------------------------------------------------
# Pure-JAX reference for validation
# ---------------------------------------------------------------------------
def decoder_forward_ref(params, x_ids, hidden, cell, output_size):
    emb = jnp.take(params["embedding"], x_ids, axis=0)
    num_layers, _, H = hidden.shape
    layer_in = emb
    new_h, new_c = [], []
    for l in range(num_layers):
        xh = jnp.concatenate([layer_in, hidden[l]], axis=1)
        gates = xh @ params[f"w_{l}"] + params[f"b_{l}"]
        i = jax.nn.sigmoid(gates[:, 0 * H:1 * H])
        f = jax.nn.sigmoid(gates[:, 1 * H:2 * H])
        g = jnp.tanh(gates[:, 2 * H:3 * H])
        o = jax.nn.sigmoid(gates[:, 3 * H:4 * H])
        c_new = f * cell[l] + i * g
        h_new = o * jnp.tanh(c_new)
        new_h.append(h_new)
        new_c.append(c_new)
        layer_in = h_new
    preds = (layer_in @ params["fc_w_t_pad"][:, :output_size]
             + params["fc_b_pad"][:, :output_size])
    return preds, jnp.stack(new_h), jnp.stack(new_c)


# ---------------------------------------------------------------------------
# Deterministic parameter initialization (shapes from Decoder.__init__),
# pre-fused/pre-transposed into the kernel layout.
# ---------------------------------------------------------------------------
def init_params(key, input_size, embedding_size, hidden_size, output_size,
                num_layers):
    keys = jax.random.split(key, 4 + 4 * num_layers)
    ki = iter(keys)
    params = {}
    params["embedding"] = 0.1 * jax.random.normal(
        next(ki), (input_size, embedding_size), jnp.float32)
    for l in range(num_layers):
        in_dim = embedding_size if l == 0 else hidden_size
        # PyTorch stores (4H, in) / (4H, H) with gate order i,f,g,o.
        w_ih = 0.1 * jax.random.normal(next(ki), (4 * hidden_size, in_dim),
                                       jnp.float32)
        w_hh = 0.1 * jax.random.normal(next(ki), (4 * hidden_size, hidden_size),
                                       jnp.float32)
        b_ih = 0.1 * jax.random.normal(next(ki), (4 * hidden_size,), jnp.float32)
        b_hh = 0.1 * jax.random.normal(next(ki), (4 * hidden_size,), jnp.float32)
        # Fused (In + H, 4H) weight so each layer is one matmul on [x ; h].
        params[f"w_{l}"] = jnp.concatenate([w_ih.T, w_hh.T], axis=0)
        params[f"b_{l}"] = (b_ih + b_hh).reshape(1, 4 * hidden_size)
    fc_w = 0.1 * jax.random.normal(next(ki), (output_size, hidden_size),
                                   jnp.float32)
    fc_b = 0.1 * jax.random.normal(next(ki), (output_size,), jnp.float32)
    # Pad the FC output dim to a multiple of 128 lanes -> unmasked vreg stores.
    o_pad = ((output_size + 127) // 128) * 128
    fc_w_t = fc_w.T                                          # (H, O)
    params["fc_w_t_pad"] = jnp.pad(fc_w_t, ((0, 0), (0, o_pad - output_size)))
    params["fc_b_pad"] = jnp.pad(fc_b.reshape(1, output_size),
                                 ((0, 0), (0, o_pad - output_size)))
    return params


if __name__ == "__main__":
    # Small, kernel-friendly shapes consistent with the module.
    input_size = 50        # vocab size (embedding rows)
    embedding_size = 32
    hidden_size = 32
    output_size = 64       # len(english.vocab) stand-in
    num_layers = 2
    batch = 8              # 2 * num_layers * hidden_size == 128 -> lane-dense state

    key = jax.random.PRNGKey(0)
    kp, kx, kh, kc = jax.random.split(key, 4)

    params = init_params(kp, input_size, embedding_size, hidden_size,
                         output_size, num_layers)

    x = jax.random.randint(kx, (batch,), 0, input_size, dtype=jnp.int32)
    hidden = jax.random.normal(kh, (num_layers, batch, hidden_size),
                               jnp.float32)
    cell = jax.random.normal(kc, (num_layers, batch, hidden_size), jnp.float32)

    # f32 MXU path (exact-ish): tight check against the pure-JAX reference.
    preds, h_out, c_out = decoder_forward(params, x, hidden, cell, output_size)
    jax.block_until_ready((preds, h_out, c_out))

    preds_ref, h_ref, c_ref = decoder_forward_ref(params, x, hidden, cell,
                                                  output_size)
    assert preds.shape == (batch, output_size)
    assert h_out.shape == (num_layers, batch, hidden_size)
    assert c_out.shape == (num_layers, batch, hidden_size)
    np.testing.assert_allclose(np.asarray(preds), np.asarray(preds_ref),
                               rtol=1e-5, atol=1e-5)
    np.testing.assert_allclose(np.asarray(h_out), np.asarray(h_ref),
                               rtol=1e-5, atol=1e-5)
    np.testing.assert_allclose(np.asarray(c_out), np.asarray(c_ref),
                               rtol=1e-5, atol=1e-5)

    # bf16 matmul-operand path (v6e/v7x MXU fast path), f32 accumulation and
    # f32 gate math: loose check.
    preds_bf, h_bf, c_bf = decoder_forward(params, x, hidden, cell, output_size,
                                           compute_dtype=jnp.bfloat16)
    jax.block_until_ready((preds_bf, h_bf, c_bf))
    np.testing.assert_allclose(np.asarray(preds_bf), np.asarray(preds_ref),
                               rtol=5e-2, atol=5e-2)
    np.testing.assert_allclose(np.asarray(h_bf), np.asarray(h_ref),
                               rtol=5e-2, atol=5e-2)
    np.testing.assert_allclose(np.asarray(c_bf), np.asarray(c_ref),
                               rtol=5e-2, atol=5e-2)

    print("KERNEL_OK")
</pallas_src>

<mosaic_0001>
module attributes {stable_mosaic.version = 11 : i64} {
  func.func @_decoder_step_kernel(%arg0: memref<8xi32, #tpu.memory_space<smem>>, %arg1: memref<50x32xf32, #tpu.memory_space<vmem>>, %arg2: memref<64x128xf32, #tpu.memory_space<vmem>>, %arg3: memref<1x128xf32, #tpu.memory_space<vmem>>, %arg4: memref<64x128xf32, #tpu.memory_space<vmem>>, %arg5: memref<1x128xf32, #tpu.memory_space<vmem>>, %arg6: memref<32x128xf32, #tpu.memory_space<vmem>>, %arg7: memref<1x128xf32, #tpu.memory_space<vmem>>, %arg8: memref<8x128xf32, #tpu.memory_space<vmem>>, %arg9: memref<8x128xf32, #tpu.memory_space<vmem>>, %arg10: memref<8x128xf32, #tpu.memory_space<vmem>>) attributes {dimension_semantics = [], scalar_prefetch = 0 : i64, scratch_operands = 0 : i64, tpu.core_type = #tpu.core_type<tc>} {
    %c0 = arith.constant 0 : index
    %0 = memref.load %arg0[%c0] : memref<8xi32, #tpu.memory_space<smem>>
    %1 = arith.index_cast %0 : i32 to index
    %c0_0 = arith.constant 0 : index
    %2 = vector.load %arg1[%1, %c0_0] : memref<50x32xf32, #tpu.memory_space<vmem>>, vector<1x32xf32>
    %c1 = arith.constant 1 : index
    %3 = memref.load %arg0[%c1] : memref<8xi32, #tpu.memory_space<smem>>
    %4 = arith.index_cast %3 : i32 to index
    %c0_1 = arith.constant 0 : index
    %5 = vector.load %arg1[%4, %c0_1] : memref<50x32xf32, #tpu.memory_space<vmem>>, vector<1x32xf32>
    %c2 = arith.constant 2 : index
    %6 = memref.load %arg0[%c2] : memref<8xi32, #tpu.memory_space<smem>>
    %7 = arith.index_cast %6 : i32 to index
    %c0_2 = arith.constant 0 : index
    %8 = vector.load %arg1[%7, %c0_2] : memref<50x32xf32, #tpu.memory_space<vmem>>, vector<1x32xf32>
    %c3 = arith.constant 3 : index
    %9 = memref.load %arg0[%c3] : memref<8xi32, #tpu.memory_space<smem>>
    %10 = arith.index_cast %9 : i32 to index
    %c0_3 = arith.constant 0 : index
    %11 = vector.load %arg1[%10, %c0_3] : memref<50x32xf32, #tpu.memory_space<vmem>>, vector<1x32xf32>
    %c4 = arith.constant 4 : index
    %12 = memref.load %arg0[%c4] : memref<8xi32, #tpu.memory_space<smem>>
    %13 = arith.index_cast %12 : i32 to index
    %c0_4 = arith.constant 0 : index
    %14 = vector.load %arg1[%13, %c0_4] : memref<50x32xf32, #tpu.memory_space<vmem>>, vector<1x32xf32>
    %c5 = arith.constant 5 : index
    %15 = memref.load %arg0[%c5] : memref<8xi32, #tpu.memory_space<smem>>
    %16 = arith.index_cast %15 : i32 to index
    %c0_5 = arith.constant 0 : index
    %17 = vector.load %arg1[%16, %c0_5] : memref<50x32xf32, #tpu.memory_space<vmem>>, vector<1x32xf32>
    %c6 = arith.constant 6 : index
    %18 = memref.load %arg0[%c6] : memref<8xi32, #tpu.memory_space<smem>>
    %19 = arith.index_cast %18 : i32 to index
    %c0_6 = arith.constant 0 : index
    %20 = vector.load %arg1[%19, %c0_6] : memref<50x32xf32, #tpu.memory_space<vmem>>, vector<1x32xf32>
    %c7 = arith.constant 7 : index
    %21 = memref.load %arg0[%c7] : memref<8xi32, #tpu.memory_space<smem>>
    %22 = arith.index_cast %21 : i32 to index
    %c0_7 = arith.constant 0 : index
    %23 = vector.load %arg1[%22, %c0_7] : memref<50x32xf32, #tpu.memory_space<vmem>>, vector<1x32xf32>
    %24 = tpu.concatenate %2, %5, %8, %11, %14, %17, %20, %23 in 0 : vector<1x32xf32>, vector<1x32xf32>, vector<1x32xf32>, vector<1x32xf32>, vector<1x32xf32>, vector<1x32xf32>, vector<1x32xf32>, vector<1x32xf32> -> vector<8x32xf32>
    %c0_8 = arith.constant 0 : index
    %c0_9 = arith.constant 0 : index
    %25 = vector.load %arg8[%c0_8, %c0_9] : memref<8x128xf32, #tpu.memory_space<vmem>>, vector<8x128xf32>
    %26 = vector.extract_strided_slice %25 {offsets = [0, 0], sizes = [8, 32], strides = [1, 1]} : vector<8x128xf32> to vector<8x32xf32>
    %27 = vector.extract_strided_slice %25 {offsets = [0, 32], sizes = [8, 32], strides = [1, 1]} : vector<8x128xf32> to vector<8x32xf32>
    %28 = tpu.concatenate %24, %26 in 1 : vector<8x32xf32>, vector<8x32xf32> -> vector<8x64xf32>
    %c0_10 = arith.constant 0 : index
    %c0_11 = arith.constant 0 : index
    %29 = vector.load %arg2[%c0_10, %c0_11] : memref<64x128xf32, #tpu.memory_space<vmem>>, vector<64x128xf32>
    %cst = arith.constant dense<0.000000e+00> : vector<8x128xf32>
    %30 = tpu.matmul %28, %29, %cst {dimension_numbers = #tpu.dot_dimension_numbers<[1], [0], [0], [1], [0, 0, 1, 1], [], []>} : vector<8x64xf32>, vector<64x128xf32>, vector<8x128xf32> -> vector<8x128xf32>
    %c0_12 = arith.constant 0 : index
    %c0_13 = arith.constant 0 : index
    %31 = vector.load %arg3[%c0_12, %c0_13] : memref<1x128xf32, #tpu.memory_space<vmem>>, vector<1x128xf32>
    %32 = vector.broadcast %31 : vector<1x128xf32> to vector<8x128xf32>
    %33 = arith.addf %30, %32 : vector<8x128xf32>
    %34 = vector.extract_strided_slice %33 {offsets = [0, 0], sizes = [8, 32], strides = [1, 1]} : vector<8x128xf32> to vector<8x32xf32>
    %35 = arith.negf %34 : vector<8x32xf32>
    %36 = math.exp %35 : vector<8x32xf32>
    %cst_14 = arith.constant 1.000000e+00 : f32
    %37 = vector.broadcast %cst_14 : f32 to vector<8x32xf32>
    %38 = arith.addf %37, %36 : vector<8x32xf32>
    %39 = arith.divf %37, %38 : vector<8x32xf32>
    %40 = vector.extract_strided_slice %33 {offsets = [0, 32], sizes = [8, 32], strides = [1, 1]} : vector<8x128xf32> to vector<8x32xf32>
    %41 = arith.negf %40 : vector<8x32xf32>
    %42 = math.exp %41 : vector<8x32xf32>
    %cst_15 = arith.constant 1.000000e+00 : f32
    %43 = vector.broadcast %cst_15 : f32 to vector<8x32xf32>
    %44 = arith.addf %43, %42 : vector<8x32xf32>
    %45 = arith.divf %43, %44 : vector<8x32xf32>
    %46 = vector.extract_strided_slice %33 {offsets = [0, 64], sizes = [8, 32], strides = [1, 1]} : vector<8x128xf32> to vector<8x32xf32>
    %47 = math.tanh %46 : vector<8x32xf32>
    %48 = vector.extract_strided_slice %33 {offsets = [0, 96], sizes = [8, 32], strides = [1, 1]} : vector<8x128xf32> to vector<8x32xf32>
    %49 = arith.negf %48 : vector<8x32xf32>
    %50 = math.exp %49 : vector<8x32xf32>
    %cst_16 = arith.constant 1.000000e+00 : f32
    %51 = vector.broadcast %cst_16 : f32 to vector<8x32xf32>
    %52 = arith.addf %51, %50 : vector<8x32xf32>
    %53 = arith.divf %51, %52 : vector<8x32xf32>
    %54 = arith.mulf %45, %27 : vector<8x32xf32>
    %55 = arith.mulf %39, %47 : vector<8x32xf32>
    %56 = arith.addf %54, %55 : vector<8x32xf32>
    %57 = math.tanh %56 : vector<8x32xf32>
    %58 = arith.mulf %53, %57 : vector<8x32xf32>
    %59 = vector.extract_strided_slice %25 {offsets = [0, 64], sizes = [8, 32], strides = [1, 1]} : vector<8x128xf32> to vector<8x32xf32>
    %60 = vector.extract_strided_slice %25 {offsets = [0, 96], sizes = [8, 32], strides = [1, 1]} : vector<8x128xf32> to vector<8x32xf32>
    %61 = tpu.concatenate %58, %59 in 1 : vector<8x32xf32>, vector<8x32xf32> -> vector<8x64xf32>
    %c0_17 = arith.constant 0 : index
    %c0_18 = arith.constant 0 : index
    %62 = vector.load %arg4[%c0_17, %c0_18] : memref<64x128xf32, #tpu.memory_space<vmem>>, vector<64x128xf32>
    %cst_19 = arith.constant dense<0.000000e+00> : vector<8x128xf32>
    %63 = tpu.matmul %61, %62, %cst_19 {dimension_numbers = #tpu.dot_dimension_numbers<[1], [0], [0], [1], [0, 0, 1, 1], [], []>} : vector<8x64xf32>, vector<64x128xf32>, vector<8x128xf32> -> vector<8x128xf32>
    %c0_20 = arith.constant 0 : index
    %c0_21 = arith.constant 0 : index
    %64 = vector.load %arg5[%c0_20, %c0_21] : memref<1x128xf32, #tpu.memory_space<vmem>>, vector<1x128xf32>
    %65 = vector.broadcast %64 : vector<1x128xf32> to vector<8x128xf32>
    %66 = arith.addf %63, %65 : vector<8x128xf32>
    %67 = vector.extract_strided_slice %66 {offsets = [0, 0], sizes = [8, 32], strides = [1, 1]} : vector<8x128xf32> to vector<8x32xf32>
    %68 = arith.negf %67 : vector<8x32xf32>
    %69 = math.exp %68 : vector<8x32xf32>
    %cst_22 = arith.constant 1.000000e+00 : f32
    %70 = vector.broadcast %cst_22 : f32 to vector<8x32xf32>
    %71 = arith.addf %70, %69 : vector<8x32xf32>
    %72 = arith.divf %70, %71 : vector<8x32xf32>
    %73 = vector.extract_strided_slice %66 {offsets = [0, 32], sizes = [8, 32], strides = [1, 1]} : vector<8x128xf32> to vector<8x32xf32>
    %74 = arith.negf %73 : vector<8x32xf32>
    %75 = math.exp %74 : vector<8x32xf32>
    %cst_23 = arith.constant 1.000000e+00 : f32
    %76 = vector.broadcast %cst_23 : f32 to vector<8x32xf32>
    %77 = arith.addf %76, %75 : vector<8x32xf32>
    %78 = arith.divf %76, %77 : vector<8x32xf32>
    %79 = vector.extract_strided_slice %66 {offsets = [0, 64], sizes = [8, 32], strides = [1, 1]} : vector<8x128xf32> to vector<8x32xf32>
    %80 = math.tanh %79 : vector<8x32xf32>
    %81 = vector.extract_strided_slice %66 {offsets = [0, 96], sizes = [8, 32], strides = [1, 1]} : vector<8x128xf32> to vector<8x32xf32>
    %82 = arith.negf %81 : vector<8x32xf32>
    %83 = math.exp %82 : vector<8x32xf32>
    %cst_24 = arith.constant 1.000000e+00 : f32
    %84 = vector.broadcast %cst_24 : f32 to vector<8x32xf32>
    %85 = arith.addf %84, %83 : vector<8x32xf32>
    %86 = arith.divf %84, %85 : vector<8x32xf32>
    %87 = arith.mulf %78, %60 : vector<8x32xf32>
    %88 = arith.mulf %72, %80 : vector<8x32xf32>
    %89 = arith.addf %87, %88 : vector<8x32xf32>
    %90 = math.tanh %89 : vector<8x32xf32>
    %91 = arith.mulf %86, %90 : vector<8x32xf32>
    %92 = tpu.concatenate %58, %56, %91, %89 in 1 : vector<8x32xf32>, vector<8x32xf32>, vector<8x32xf32>, vector<8x32xf32> -> vector<8x128xf32>
    %c0_25 = arith.constant 0 : index
    %c0_26 = arith.constant 0 : index
    %93 = vector.load %arg9[%c0_25, %c0_26] : memref<8x128xf32, #tpu.memory_space<vmem>>, vector<8x128xf32>
    tpu.vector_store %arg9[%c0_25, %c0_26], %92 {strides = array<i32>} : memref<8x128xf32, #tpu.memory_space<vmem>>, vector<8x128xf32>,
    %c0_27 = arith.constant 0 : index
    %c0_28 = arith.constant 0 : index
    %94 = vector.load %arg6[%c0_27, %c0_28] : memref<32x128xf32, #tpu.memory_space<vmem>>, vector<32x128xf32>
    %cst_29 = arith.constant dense<0.000000e+00> : vector<8x128xf32>
    %95 = tpu.matmul %91, %94, %cst_29 {dimension_numbers = #tpu.dot_dimension_numbers<[1], [0], [0], [1], [0, 0, 1, 1], [], []>} : vector<8x32xf32>, vector<32x128xf32>, vector<8x128xf32> -> vector<8x128xf32>
    %c0_30 = arith.constant 0 : index
    %c0_31 = arith.constant 0 : index
    %96 = vector.load %arg7[%c0_30, %c0_31] : memref<1x128xf32, #tpu.memory_space<vmem>>, vector<1x128xf32>
    %97 = vector.broadcast %96 : vector<1x128xf32> to vector<8x128xf32>
    %98 = arith.addf %95, %97 : vector<8x128xf32>
    %c0_32 = arith.constant 0 : index
    %c0_33 = arith.constant 0 : index
    %99 = vector.load %arg10[%c0_32, %c0_33] : memref<8x128xf32, #tpu.memory_space<vmem>>, vector<8x128xf32>
    tpu.vector_store %arg10[%c0_32, %c0_33], %98 {strides = array<i32>} : memref<8x128xf32, #tpu.memory_space<vmem>>, vector<8x128xf32>,
    return
  }
}

</mosaic_0001>

<bundles_post_ra>
// kernel: tpu_custom_call.1
= control target key start
LH: loop header
LB: loop body
LE: loop exit
PB: predicated region body
PF: predicated region fallthrough
CT: control target
= control target key end

     0   :  { %16 = vsyncpa [#allocation5], 0  ;;  %s1094_s0 = inlined_call_operand.vmem [shape: s32[8], index: 0, kind: input, shape index: {}]   ;;  %s1095_s1 = inlined_call_operand.vmem [shape: f32[50,32], index: 1, kind: input, shape index: {}]   ;;  %s1096_s2 = inlined_call_operand.vmem [shape: f32[64,128], index: 2, kind: input, shape index: {}]   ;;  %s1097_s3 = inlined_call_operand.vmem [shape: f32[1,128], index: 3, kind: input, shape index: {}]   ;;  %s1098_s4 = inlined_call_operand.hbm [shape: f32[64,128], index: 4, kind: input, shape index: {}]   ;;  %s1099_s5 = inlined_call_operand.hbm [shape: f32[1,128], index: 5, kind: input, shape index: {}]   ;;  %s1100_s6 = inlined_call_operand.vmem [shape: f32[32,128], index: 6, kind: input, shape index: {}]   ;;  %s1101_s7 = inlined_call_operand.hbm [shape: f32[1,128], index: 7, kind: input, shape index: {}]   ;;  %s1102_s8 = inlined_call_operand.hbm [shape: f32[8,128], index: 8, kind: input, shape index: {}, may-alias: {8,9}]   ;;  %s1103_s9 = inlined_call_operand.hbm [shape: f32[8,128], index: 9, kind: output, shape index: {0}, may-alias: {8,9}]   ;;  %s1104_s10 = inlined_call_operand.hbm [shape: f32[8,128], index: 10, kind: output, shape index: {1}]  }
   0x1   :  { %17 = vsyncpa [#allocation3], 0 }
   0x2   :  { %18 = vsyncpa [#allocation8], 0 }
   0x3   :  { %19 = vsyncpa [#allocation11], 0 }
   0x4   :  { %20 = vsyncpa [#allocation4], 0 }
   0x5   :  { %21 = vsyncpa [#allocation14], 0  ;;  %s28_s15 = sshll.u32 %s1094_s0, 4  ;;  %s843_s16 = smov [#allocation7]   ;;  %s29_s15 = int_to_ptr.vmem [resolvable:$true] %s28_s15 }
   0x6   :  { %s56_s17 = sshll.u32 %s843_s16, 4  ;;  %s687_s20 = scalar_lea.hbm %s1099_s5, 16  ;;  %s57_s17 = int_to_ptr.vmem [resolvable:$true] %s56_s17 }
   0x7   :  { %p688_p0 = scmp.ne.s32.totalorder %s1099_s5, %s687_s20  ;;  %p691_p1 = scmp.lt.u32.totalorder %s687_s20, %s1099_s5 }
   0x9   :  { %p693_p2 = pnand %p691_p1, %p688_p0 }
   0xb   :  { %696 = shalt.err (!%p693_p2)
}
   0xc   :  { %s697_s25 = scalar_lea.vmem %s57_s17, 16  ;;  %s701_s0 = scalar_lea.vmem %s57_s17, 32 }
   0xd   :  { %p698_p3 = scmp.ne.s32.totalorder %s57_s17, %s697_s25  ;;  %p702_p4 = scmp.lt.s32.totalorder %s57_s17, %s57_s17 }
   0xe   :  { %p703_p5 = scmp.lt.s32.totalorder %s701_s0, %s697_s25 }
  0x10   :  { %p704_p6 = por %p703_p5, %p702_p4 }
  0x12   :  { %p705_p7 = pnand %p704_p6, %p698_p3 }
  0x14   :  { %708 = shalt.err (!%p705_p7)
}
  0x15   :  { %59 = dma.hbm_to_vmem [thread:$0]  %s1099_s5, 16, %s57_s17, [#allocation8]  }
  0x16   :  { %s709_s28 = scalar_lea.vmem %s29_s15, 16  ;;  %p714_p9 = scmp.lt.s32.totalorder %s29_s15, %s29_s15 }
  0x17   :  { %p710_p8 = scmp.ne.s32.totalorder %s29_s15, %s709_s28  ;;  %p715_p10 = scmp.lt.s32.totalorder %s709_s28, %s709_s28 }
  0x19   :  { %p716_p11 = por %p715_p10, %p714_p9 }
  0x1b   :  { %p717_p12 = pnand %p716_p11, %p710_p8 }
  0x1d   :  { %720 = shalt.err (!%p717_p12)
}
  0x1e   :  { %s844_s29 = smov [#allocation2]   ;;  %s845_s30 = smov [#allocation6]  }
  0x1f   :  { %31 = dma.vmem_to_smem %s29_s15, 16, %s844_s29, [#allocation5]  }
  0x20   :  { %s43_s11 = sshll.u32 %s845_s30, 4  ;;  %s721_s14 = scalar_lea.hbm %s1098_s4, 1024  ;;  %s44_s11 = int_to_ptr.vmem [resolvable:$true] %s43_s11 }
  0x21   :  { %p722_p13 = scmp.ne.s32.totalorder %s1098_s4, %s721_s14  ;;  %p725_p0 = scmp.lt.u32.totalorder %s721_s14, %s1098_s4 }
  0x23   :  { %p727_p1 = pnand %p725_p0, %p722_p13 }
  0x25   :  { %730 = shalt.err (!%p727_p1)
}
  0x26   :  { %s731_s19 = scalar_lea.vmem %s44_s11, 1024  ;;  %p736_p3 = scmp.lt.s32.totalorder %s44_s11, %s44_s11 }
  0x27   :  { %p732_p2 = scmp.ne.s32.totalorder %s44_s11, %s731_s19  ;;  %p737_p4 = scmp.lt.s32.totalorder %s731_s19, %s731_s19 }
  0x29   :  { %p738_p5 = por %p737_p4, %p736_p3 }
  0x2b   :  { %p739_p6 = pnand %p738_p5, %p732_p2 }
  0x2d   :  { %742 = shalt.err (!%p739_p6)
}
  0x2e   :  { %s846_s15 = smov 128   ;;  %s847_s20 = smov 8  }
  0x2f   :  { %49 = dma.hbm_to_vmem [thread:$0]  %s1098_s4, 1024, %s44_s11, [#allocation3], %s846_s15, %s846_s15, %s847_s20  }
  0x30   :  { %s848_s23 = smov [#allocation9]   ;;  %s849_s25 = smov [#allocation10]  }
  0x31   :  { %s68_s24 = sshll.u32 %s848_s23, 4  ;;  %s78_s0 = sshll.u32 %s849_s25, 4  ;;  %s69_s24 = int_to_ptr.vmem [resolvable:$true] %s68_s24  ;;  %s79_s0 = int_to_ptr.vmem [resolvable:$true] %s78_s0 }
  0x32   :  { %s743_s28 = scalar_lea.hbm %s1101_s7, 16 }
  0x33   :  { %p744_p7 = scmp.ne.s32.totalorder %s1101_s7, %s743_s28  ;;  %p747_p8 = scmp.lt.u32.totalorder %s743_s28, %s1101_s7 }
  0x35   :  { %p749_p9 = pnand %p747_p8, %p744_p7 }
  0x37   :  { %752 = shalt.err (!%p749_p9)
}
  0x38   :  { %s753_s4 = scalar_lea.vmem %s69_s24, 16  ;;  %s757_s11 = scalar_lea.vmem %s69_s24, 32 }
  0x39   :  { %p754_p10 = scmp.ne.s32.totalorder %s69_s24, %s753_s4  ;;  %p758_p11 = scmp.lt.s32.totalorder %s69_s24, %s69_s24 }
  0x3a   :  { %p759_p12 = scmp.lt.s32.totalorder %s757_s11, %s753_s4 }
  0x3c   :  { %p760_p13 = por %p759_p12, %p758_p11 }
  0x3e   :  { %p761_p0 = pnand %p760_p13, %p754_p10 }
  0x40   :  { %764 = shalt.err (!%p761_p0)
}
  0x41   :  { %71 = dma.hbm_to_vmem [thread:$0]  %s1101_s7, 16, %s69_s24, [#allocation8]  }
  0x42   :  { %s765_s17 = scalar_lea.hbm %s1102_s8, 128 }
  0x43   :  { %p766_p1 = scmp.ne.s32.totalorder %s1102_s8, %s765_s17  ;;  %p769_p2 = scmp.lt.u32.totalorder %s765_s17, %s1102_s8 }
  0x45   :  { %p771_p3 = pnand %p769_p2, %p766_p1 }
  0x47   :  { %774 = shalt.err (!%p771_p3)
}
  0x48   :  { %s775_s22 = scalar_lea.vmem %s79_s0, 128  ;;  %p780_p5 = scmp.lt.s32.totalorder %s79_s0, %s79_s0 }
  0x49   :  { %p776_p4 = scmp.ne.s32.totalorder %s79_s0, %s775_s22  ;;  %p781_p6 = scmp.lt.s32.totalorder %s775_s22, %s775_s22 }
  0x4b   :  { %p782_p7 = por %p781_p6, %p780_p5 }
  0x4d   :  { %p783_p8 = pnand %p782_p7, %p776_p4 }
  0x4f   :  { %786 = shalt.err (!%p783_p8)
}
  0x50   :  { %81 = dma.hbm_to_vmem [thread:$0]  %s1102_s8, 128, %s79_s0, [#allocation11]  }
  0x51   :  { %831 = dma.done.wait [#allocation5], 16  }
  0x52   :  { %832 = vsyncadd [#allocation5], 4294967280 }
  0x53   :  { %833 = dma.done.wait [#allocation3], 1024  }
  0x54   :  { %834 = vsyncadd [#allocation3], 4294966272 }
  0x55   :  { %835 = dma.done.wait [#allocation8], 32  }
  0x56   :  { %836 = vsyncadd [#allocation8], 4294967264 }
  0x57   :  { %837 = dma.done.wait [#allocation11], 128  }
  0x58   :  { %838 = vsyncadd [#allocation11], 4294967168 }
  0x59   :  { %97 = sfence }
  0x5a   :  { %v964_v0 = vld [vmem:[#allocation10] sm:$0xff]  ;;  %s850_s8 = smov 32   ;;  %v851_v3 = vmov 0.0|0.0   ;;  %v166_v5 = vld [vmem:[%s1096_s2 + $0x10] sm:$0xff]  ;;  %v167_v6 = vld [vmem:[%s1096_s2 + $0x18] sm:$0xff]  ;;  %vm852_vm0 = vmmov 0  }
  0x5b   :  { %v164_v1 = vld [vmem:[%s1096_s2] sm:$0xff]  ;;  %v165_v2 = vld [vmem:[%s1096_s2 + $0x8] sm:$0xff]  ;;  %159 = vrot.lane.b32.xlu0 %v964_v0, %s850_s8  ;;  %626 = vmatprep.subr.bf16.mxu0 %v851_v3  ;;  %v630_v7 = vpack.c.bf16 %v167_v6, %v166_v5  ;;  %v853_v11 = vmov 0.0   ;;  %v170_v12 = vld [vmem:[%s1096_s2 + $0x30] sm:$0xff]  ;;  %s539_s17 = sld [smem:[#allocation2 + $0x1]]  ;;  %s540_s19 = sld [smem:[#allocation2 + $0x2]] }
  0x5c   :  { %v627_v4 = vpack.c.bf16 %v165_v2, %v164_v1  ;;  %638 = vmatprep.subr.bf16.mxu1 %v851_v3  ;;  %v168_v8 = vld [vmem:[%s1096_s2 + $0x20] sm:$0xff]  ;;  %v169_v9 = vld [vmem:[%s1096_s2 + $0x28] sm:$0xff]  ;;  %593 = vmatprep.mubr.msk.f32.mxu0 %vm852_vm0, %v853_v11  ;;  %v171_v13 = vld [vmem:[%s1096_s2 + $0x38] sm:$0xff]  ;;  %s98_s15 = sld [smem:[#allocation2]]  ;;  %s541_s20 = sld [smem:[#allocation2 + $0x3]]  ;;  %vm143_vm1 = vcmask 1040384  }
  0x5d   :  { %v633_v10 = vpack.c.bf16 %v169_v9, %v168_v8  ;;  %612 = vmatprep.mubr.msk.f32.mxu1 %vm852_vm0, %v853_v11  ;;  %v636_v14 = vpack.c.bf16 %v171_v13, %v170_v12  ;;  %s542_s23 = sld [smem:[#allocation2 + $0x4]]  ;;  %s543_s28 = sld [smem:[#allocation2 + $0x5]]  ;;  %vm145_vm2 = vcmask 1041408   ;;  %vm147_vm3 = vcmask 1042432   ;;  %v546_v39 = vld [vmem:[%s1097_s3] ss:$0 sm:$0xff] }
  0x5e   :  { %628 = vmatpush3.bf16.msra.mxu0 %v627_v4  ;;  %s544_s13 = sld [smem:[#allocation2 + $0x6]]  ;;  %s545_s16 = sld [smem:[#allocation2 + $0x7]]  ;;  %vm149_vm4 = vcmask 1043456   ;;  %vm151_vm5 = vcmask 1044480   ;;  %vm153_vm6 = vcmask 1045504   ;;  %vm155_vm7 = vcmask 1046528  }
  0x5f   :  { %629 = vmatprep.subr.bf16.mxu0 %v851_v3  ;;  %vm162_vm8 = vcmask 261120   ;;  %vm179_vm9 = vcmask 523264   ;;  %s854_s2 = smov 64   ;;  %v285_v53 = vld [vmem:[#allocation6] sm:$0xff]  ;;  %v286_v54 = vld [vmem:[#allocation6 + $0x8] sm:$0xff]  ;;  %v287_v55 = vld [vmem:[#allocation6 + $0x10] sm:$0xff] }
  0x60   :  { %v639_v56 = vpack.c.bf16 %v286_v54, %v285_v53  ;;  %v288_v57 = vld [vmem:[#allocation6 + $0x18] sm:$0xff]  ;;  %v289_v59 = vld [vmem:[#allocation6 + $0x20] sm:$0xff]  ;;  %v290_v60 = vld [vmem:[#allocation6 + $0x28] sm:$0xff]  ;;  %s855_s3 = smov 96   ;;  %vm410_vm10 = vcmask 785408  }
  0x61   :  { %s102_s7 = scalar_lea.vmem %s1095_s1, %s539_s17  ;;  %s105_s25 = scalar_lea.vmem %s1095_s1, %s540_s19  ;;  %v642_v58 = vpack.c.bf16 %v288_v57, %v287_v55  ;;  %v645_v61 = vpack.c.bf16 %v290_v60, %v289_v59  ;;  %v291_v62 = vld [vmem:[#allocation6 + $0x30] sm:$0xff]  ;;  %v292_v63 = vld [vmem:[#allocation6 + $0x38] sm:$0xff]  ;;  %v549_v9 = vld [vmem:[#allocation7] ss:$0 sm:$0xff] }
  0x62   :  { %631 = vmatpush3.bf16.msra.mxu0 %v630_v7  ;;  %v103_v15 = vld [vmem:[%s102_s7] sm:$0x1]  ;;  %s99_s0 = scalar_lea.vmem %s1095_s1, %s98_s15  ;;  %s108_s12 = scalar_lea.vmem %s1095_s1, %s541_s20  ;;  %640 = vmatpush3.bf16.msra.mxu1 %v639_v56  ;;  %v648_v2 = vpack.c.bf16 %v292_v63, %v291_v62 }
  0x63   :  { %632 = vmatprep.subr.bf16.mxu0 %v851_v3  ;;  %v106_v16 = vld [vmem:[%s105_s25] sm:$0x1]  ;;  %v123_v17 = vrot.slane %v103_v15, 7  ;;  %s111_s14 = scalar_lea.vmem %s1095_s1, %s542_s23  ;;  %s114_s17 = scalar_lea.vmem %s1095_s1, %s543_s28  ;;  %641 = vmatprep.subr.bf16.mxu1 %v851_v3 }
  0x64   :  { %v100_v18 = vld [vmem:[%s99_s0] sm:$0x1]  ;;  %v126_v20 = vrot.slane %v106_v16, 6  ;;  %s117_s20 = scalar_lea.vmem %s1095_s1, %s544_s13  ;;  %s120_s7 = scalar_lea.vmem %s1095_s1, %s545_s16 }
  0x65   :  { %v109_v19 = vld [vmem:[%s108_s12] sm:$0x1]  ;;  %v144_v21 = vsel %vm143_vm1, %v100_v18, %v123_v17 }
  0x66   :  { %634 = vmatpush3.bf16.msra.mxu0 %v633_v10  ;;  %v112_v22 = vld [vmem:[%s111_s14] sm:$0x1]  ;;  %v129_v23 = vrot.slane %v109_v19, 5  ;;  %v146_v24 = vsel %vm145_vm2, %v144_v21, %v126_v20  ;;  %643 = vmatpush3.bf16.msra.mxu1 %v642_v58 }
  0x67   :  { %635 = vmatprep.subr.bf16.mxu0 %v851_v3  ;;  %v115_v25 = vld [vmem:[%s114_s17] sm:$0x1]  ;;  %v132_v26 = vrot.slane %v112_v22, 4  ;;  %644 = vmatprep.subr.bf16.mxu1 %v851_v3 }
  0x68   :  { %v148_v27 = vsel %vm147_vm3, %v146_v24, %v129_v23  ;;  %v118_v28 = vld [vmem:[%s117_s20] sm:$0x1]  ;;  %v135_v29 = vrot.slane %v115_v25, 3  ;;  %v414_v24 = vld [vmem:[%s1100_s6 + $0x8] sm:$0xff]  ;;  %v415_v25 = vld [vmem:[%s1100_s6 + $0x10] sm:$0xff] }
  0x69   :  { %v150_v30 = vsel %vm149_vm4, %v148_v27, %v132_v26  ;;  %v121_v31 = vld [vmem:[%s120_s7] sm:$0x1]  ;;  %v138_v32 = vrot.slane %v118_v28, 2  ;;  %v416_v27 = vld [vmem:[%s1100_s6 + $0x18] sm:$0xff] }
  0x6a   :  { %637 = vmatpush3.bf16.msra.mxu0 %v636_v14  ;;  %v152_v33 = vsel %vm151_vm5, %v150_v30, %v135_v29  ;;  %v141_v34 = vrot.slane %v121_v31, 1  ;;  %646 = vmatpush3.bf16.msra.mxu1 %v645_v61  ;;  %v413_v23 = vld [vmem:[%s1100_s6] sm:$0xff]  ;;  %v654_v28 = vpack.c.bf16 %v416_v27, %v415_v25  ;;  %s856_s6 = smov [#allocation12]  }
  0x6b   :  { %650 = vmatprep.subr.bf16.mxu0 %v851_v3  ;;  %v154_v35 = vsel %vm153_vm6, %v152_v33, %v138_v32  ;;  %647 = vmatprep.subr.bf16.mxu1 %v851_v3  ;;  %v651_v26 = vpack.c.bf16 %v414_v24, %v413_v23  ;;  %s505_s12 = sshll.u32 %s856_s6, 4  ;;  %s506_s12 = int_to_ptr.vmem [resolvable:$true] %s505_s12 }
  0x6c   :  { %v156_v36 = vsel %vm155_vm7, %v154_v35, %v141_v34  ;;  %s787_s13 = scalar_lea.vmem %s506_s12, 128  ;;  %p792_p10 = scmp.lt.s32.totalorder %s506_s12, %s506_s12 }
  0x6d   :  { %p788_p9 = scmp.ne.s32.totalorder %s506_s12, %s787_s13  ;;  %p793_p11 = scmp.lt.s32.totalorder %s787_s13, %s787_s13 }
  0x6e   :  { %649 = vmatpush3.bf16.msra.mxu1 %v648_v2 }
  0x6f   :  { %p794_p12 = por %p793_p11, %p792_p10 }
  0x71   :  { %p795_p13 = pnand %p794_p12, %p788_p9 }
  0xcd   :  { %v160_v37 = vpop.permute.xlu0 %159 }
  0xce   :  { %v163_v38 = vsel %vm162_vm8, %v156_v36, %v160_v37 }
  0xcf   :  { %594 = vmatmul.mubr.msk.f32.vlgmr.msra.gmra.mrb[0].mxu0 %vm179_vm9, %v163_v38 }
  0xd0   :  { %623 = vmatprep.mubr.msk.f32.mxu0 %vm852_vm0, %v853_v11  ;;  %652 = vmatpush3.bf16.msra.mxu0 %v651_v26 }
  0xd1   :  { %653 = vmatprep.subr.bf16.mxu0 %v851_v3 }
  0xd4   :  { %655 = vmatpush3.bf16.msra.mxu0 %v654_v28 }
 0x1a2   :  { %v249_v40 = vpop.f32.mrb[0].mxu0 }
 0x1a3   :  { %v250_v41 = vadd.f32 %v546_v39, %v249_v40  ;;  %v595_v42 = vpop.f32.mrb[1].mxu0 }
 0x1a5   :  { %671 = vtanh.f32 %v250_v41  ;;  %v548_v44 = vmul.f32 -1.442695, %v250_v41 }
 0x1a7   :  { %673 = vpow2.f32 %v548_v44 }
 0x1af   :  { %v672_v43 = vpop.eup %671 }
 0x1b0   :  { %262 = vrot.lane.b32.xlu0 %v672_v43, %s854_s2 }
 0x1b1   :  { %v674_v45 = vpop.eup %673 }
 0x1b2   :  { %v256_v46 = vadd.f32 1.0, %v674_v45 }
 0x1b4   :  { %675 = vrcp.f32 %v256_v46 }
 0x1be   :  { %v676_v47 = vpop.eup %675 }
 0x1bf   :  { %v260_v50 = vmul.f32 %v676_v47, %v964_v0 }
 0x222   :  { %v263_v48 = vpop.permute.xlu0 %262 }
 0x223   :  { %v265_v49 = vmul.f32 %v676_v47, %v263_v48 }
 0x225   :  { %267 = vrot.lane.b32.xlu1 %v265_v49, %s850_s8 }
 0x297   :  { %v268_v51 = vpop.permute.xlu1 %267 }
 0x298   :  { %v1033_v52 = vadd.f32 %v268_v51, %v260_v50 }
 0x29a   :  { %677 = vtanh.f32 %v1033_v52 }
 0x2a4   :  { %v678_v1 = vpop.eup %677 }
 0x2a5   :  { %273 = vrot.lane.b32.xlu1 %v678_v1, %s854_s2 }
 0x2a9   :  { %281 = vrot.lane.b32.xlu1 %v964_v0, %s855_s3 }
 0x2ad   :  { %380 = vrot.lane.b32.xlu1 %v964_v0, %s854_s2 }
 0x317   :  { %v274_v4 = vpop.permute.xlu1 %273 }
 0x318   :  { %v276_v5 = vmul.f32 %v676_v47, %v274_v4 }
 0x31a   :  { %278 = vrot.lane.b32.xlu0 %v276_v5, %s850_s8 }
 0x31b   :  { %v282_v6 = vpop.permute.xlu1 %281 }
 0x31f   :  { %v381_v19 = vpop.permute.xlu1 %380 }
 0x38c   :  { %v279_v7 = vpop.permute.xlu0 %278 }
 0x38d   :  { %v284_v8 = vsel %vm162_vm8, %v279_v7, %v282_v6  ;;  %v408_v3 = vsel %vm162_vm8, %v279_v7, %v1033_v52 }
 0x38e   :  { %613 = vmatmul.mubr.msk.f32.vlgmr.msra.gmra.mrb[0].mxu1 %vm179_vm9, %v284_v8 }
 0x461   :  { %v369_v10 = vpop.f32.mrb[0].mxu1 }
 0x462   :  { %v370_v11 = vadd.f32 %v549_v9, %v369_v10  ;;  %v614_v12 = vpop.f32.mrb[1].mxu1 }
 0x464   :  { %679 = vtanh.f32 %v370_v11  ;;  %v551_v14 = vmul.f32 -1.442695, %v370_v11 }
 0x466   :  { %681 = vpow2.f32 %v551_v14 }
 0x46e   :  { %v680_v13 = vpop.eup %679 }
 0x46f   :  { %385 = vrot.lane.b32.xlu0 %v680_v13, %s854_s2 }
 0x470   :  { %v682_v0 = vpop.eup %681 }
 0x471   :  { %v376_v15 = vadd.f32 1.0, %v682_v0 }
 0x473   :  { %683 = vrcp.f32 %v376_v15 }
 0x47d   :  { %v684_v16 = vpop.eup %683 }
 0x47e   :  { %v383_v20 = vmul.f32 %v684_v16, %v381_v19 }
 0x4e1   :  { %v386_v17 = vpop.permute.xlu0 %385 }
 0x4e2   :  { %v388_v18 = vmul.f32 %v684_v16, %v386_v17 }
 0x4e4   :  { %390 = vrot.lane.b32.xlu0 %v388_v18, %s850_s8 }
 0x556   :  { %v391_v21 = vpop.permute.xlu0 %390 }
 0x557   :  { %v393_v22 = vadd.f32 %v391_v21, %v383_v20 }
 0x559   :  { %685 = vtanh.f32 %v393_v22 }
 0x563   :  { %v686_v29 = vpop.eup %685 }
 0x564   :  { %396 = vrot.lane.b32.xlu1 %v686_v29, %s854_s2 }
 0x5d6   :  { %v397_v30 = vpop.permute.xlu1 %396 }
 0x5d7   :  { %v399_v31 = vmul.f32 %v684_v16, %v397_v30 }
 0x5d9   :  { %401 = vrot.lane.b32.xlu1 %v399_v31, %s855_s3  ;;  %424 = vrot.lane.b32.xlu0 %v399_v31, %s850_s8 }
 0x5dd   :  { %405 = vrot.lane.b32.xlu0 %v393_v22, %s854_s2 }
 0x64b   :  { %v425_v32 = vpop.permute.xlu0 %424  ;;  %v402_v33 = vpop.permute.xlu1 %401 }
 0x64c   :  { %624 = vmatmul.mubr.msk.f32.vlgmr.msra.gmra.mrb[2].mxu0 %vm162_vm8, %v425_v32  ;;  %v409_v34 = vsel %vm179_vm9, %v408_v3, %v402_v33 }
 0x64f   :  { %v406_v35 = vpop.permute.xlu0 %405 }
 0x650   :  { %v411_v36 = vsel %vm410_vm10, %v409_v34, %v406_v35 }
 0x651   :  { %412 = vst [vmem:[#allocation12] sm:$0xff] %v411_v36 }
 0x652   :  { %798 = shalt.err (!%p795_p13)
}
 0x653   :  { %s799_s11 = scalar_lea.hbm %s1103_s9, 128 }
 0x654   :  { %p800_p0 = scmp.ne.s32.totalorder %s1103_s9, %s799_s11  ;;  %p803_p1 = scmp.lt.u32.totalorder %s799_s11, %s1103_s9 }
 0x656   :  { %p805_p2 = pnand %p803_p1, %p800_p0 }
 0x658   :  { %808 = shalt.err (!%p805_p2)
}
 0x659   :  { %508 = dma.vmem_to_hbm [thread:$0]  %s506_s12, 128, %s1103_s9, [#allocation4]   ;;  %v552_v37 = vld [vmem:[#allocation9] ss:$0 sm:$0xff] }
 0x65a   :  { %s857_s15 = smov [#allocation13]  }
 0x65b   :  { %s515_s20 = sshll.u32 %s857_s15, 4  ;;  %s516_s20 = int_to_ptr.vmem [resolvable:$true] %s515_s20 }
 0x65c   :  { %s809_s21 = scalar_lea.vmem %s516_s20, 128  ;;  %p814_p4 = scmp.lt.s32.totalorder %s516_s20, %s516_s20 }
 0x65d   :  { %p810_p3 = scmp.ne.s32.totalorder %s516_s20, %s809_s21  ;;  %p815_p5 = scmp.lt.s32.totalorder %s809_s21, %s809_s21 }
 0x65f   :  { %p816_p6 = por %p815_p5, %p814_p4 }
 0x661   :  { %p817_p7 = pnand %p816_p6, %p810_p3 }
 0x71f   :  { %v494_v38 = vpop.f32.mrb[2].mxu0 }
 0x720   :  { %v495_v39 = vadd.f32 %v552_v37, %v494_v38  ;;  %v625_v40 = vpop.f32.mrb[3].mxu0 }
 0x722   :  { %498 = vst [vmem:[#allocation13] sm:$0xff] %v495_v39 }
 0x723   :  { %820 = shalt.err (!%p817_p7)
}
 0x724   :  { %s821_s1 = scalar_lea.hbm %s1104_s10, 128 }
 0x725   :  { %p822_p8 = scmp.ne.s32.totalorder %s1104_s10, %s821_s1  ;;  %p825_p9 = scmp.lt.u32.totalorder %s821_s1, %s1104_s10 }
 0x727   :  { %p827_p10 = pnand %p825_p9, %p822_p8 }
 0x729   :  { %830 = shalt.err (!%p827_p10)
}
 0x72a   :  { %518 = dma.vmem_to_hbm [thread:$0]  %s516_s20, 128, %s1104_s10, [#allocation14]  }
 0x72b   :  { %839 = dma.done.wait [#allocation4], 128  }
 0x72c   :  { %840 = vsyncadd [#allocation4], 4294967168 }
 0x72d   :  { %841 = dma.done.wait [#allocation14], 128  }
 0x72e   :  { %842 = vsyncadd [#allocation14], 4294967168 }
 0x72f   :  { %525 = vsyncpa [#allocation3], 1 }
 0x730   :  { %526 = vsyncpa [#allocation8], 1 }
 0x731   :  { %527 = vsyncpa [#allocation11], 1 }
 0x732   :  { %528 = vsyncpa [#allocation4], 1 }
 0x733   :  { %529 = vsyncpa [#allocation14], 1 }
 0x734   :  { %530 = vsyncpa [#allocation5], 1 }

</bundles_post_ra>
